<compile_context>
chip_gen: v7x
topology: tpu7x:2x2x1
jax: 0.10.0
libtpu: 0.0.40
codegen_flags: <defaults>
</compile_context>

<pallas_src>
import functools
import math

import jax
import jax.numpy as jnp
from jax.experimental import pallas as pl
from jax.experimental.pallas import tpu as pltpu


LANE = 128      # last-dim tiling (f32/bf16 lane width)
SUBLANE = 8     # second-to-last-dim tiling (f32)


def _round_up(x, m):
    return ((x + m - 1) // m) * m


# ----------------------------- Pallas kernel -----------------------------

def _fused_mlp_kernel(*refs, num_linear, compute_dtype):
    """refs = (x_ref, w1, ..., wK, b_all_ref, o_ref).

    All-but-last linears get ReLU.  Weights arrive pre-cast to `compute_dtype`
    (bf16 on the fast path); activations are cast to `compute_dtype` only at
    the MXU, while accumulation, bias add and ReLU stay in f32.
    """
    x_ref = refs[0]
    w_refs = refs[1:1 + num_linear]
    b_all_ref = refs[1 + num_linear]
    o_ref = refs[2 + num_linear]

    h = x_ref[...]                                             # f32 activations
    for i in range(num_linear):
        w_ref = w_refs[i]
        width = w_ref.shape[1]                                 # padded out-features
        y = jnp.dot(h.astype(compute_dtype), w_ref[...],       # MXU, f32 accumulate
                    preferred_element_type=jnp.float32)
        y = y + b_all_ref[i:i + 1, :width]                     # f32 bias add (VPU)
        if i < num_linear - 1:                                 # hidden layers: ReLU
            y = jnp.maximum(y, 0.0)
        h = y
        # TODO(synk): for very large hidden dims on v7x, keep `h` in bf16
        # between layers to cap intermediate-activation VMEM.
    o_ref[...] = h.astype(o_ref.dtype)


# ----------------------------- Param init (matches nn.Linear) -----------------------------

def xavier_uniform(key, out_features, in_features, dtype=jnp.float32):
    # matches torch.nn.init.xavier_uniform_ (gain=1)
    limit = math.sqrt(6.0 / (in_features + out_features))
    return jax.random.uniform(
        key, (out_features, in_features), dtype=dtype, minval=-limit, maxval=limit
    )


def linear_bias_default(key, out_features, in_features, dtype=jnp.float32):
    # PyTorch nn.Linear default bias init: U(-1/sqrt(fan_in), 1/sqrt(fan_in))
    bound = 1.0 / math.sqrt(in_features)
    return jax.random.uniform(
        key, (out_features,), dtype=dtype, minval=-bound, maxval=bound
    )


def init_mlp_params(key, input_dim, hidden_dim, output_dim, num_layers):
    """Returns dict layer_name -> (W (out,in), b (out,)) mirroring the module."""
    params = {}
    key, kw, kb = jax.random.split(key, 3)
    params["layer1"] = (
        xavier_uniform(kw, hidden_dim, input_dim),
        linear_bias_default(kb, hidden_dim, input_dim),
    )
    key, kw, kb = jax.random.split(key, 3)
    params["layer0"] = (
        xavier_uniform(kw, output_dim, hidden_dim),
        linear_bias_default(kb, output_dim, hidden_dim),
    )
    for nl in range(2, num_layers + 1):
        key, kw, kb = jax.random.split(key, 3)
        params["layer{}".format(nl)] = (
            xavier_uniform(kw, hidden_dim, hidden_dim),
            linear_bias_default(kb, hidden_dim, hidden_dim),
        )
    return params


# ----------------------------- One-time param prep (transpose + pad + cast) -----------------------------

def prepare_mlp_params(params, input_dim, hidden_dim, output_dim, num_layers,
                       use_bf16=True):
    """Pre-transpose weights to (in, out), zero-pad feature dims to 128
    multiples, cast weights to bf16 (MXU operand dtype), and pack all biases
    into a single (K, max_width) f32 array.
    Layer order: layer1, layer2, ..., layerN, layer0 (matches forward)."""
    in_p = _round_up(input_dim, LANE)
    h_p = _round_up(hidden_dim, LANE)
    out_p = _round_up(output_dim, LANE)
    w_dtype = jnp.bfloat16 if use_bf16 else jnp.float32

    names = (["layer1"]
             + ["layer{}".format(nl) for nl in range(2, num_layers + 1)]
             + ["layer0"])
    in_dims = [in_p] + [h_p] * (num_layers - 1) + [h_p]
    out_dims = [h_p] * num_layers + [out_p]
    max_w = max(out_dims)

    weights = []
    bias_rows = []
    for name, ip, op in zip(names, in_dims, out_dims):
        W, b = params[name]
        Wt = jnp.pad(W.T, ((0, ip - W.shape[1]), (0, op - W.shape[0])))
        weights.append(Wt.astype(w_dtype))
        bias_rows.append(jnp.pad(b, (0, max_w - b.shape[0])))
    b_all = jnp.stack(bias_rows).astype(jnp.float32)           # (K, max_w) f32

    return {
        "weights": weights,
        "bias": b_all,
        "dims": (input_dim, hidden_dim, output_dim, num_layers),
        "padded": (in_p, h_p, out_p),
    }


# ----------------------------- Tiling / VMEM helpers -----------------------------

def _vmem_capacity_bytes():
    try:
        return int(pltpu.get_tpu_info().vmem_capacity_bytes)
    except Exception:
        return 64 << 20   # conservative: v7x per-TensorCore VMEM


def _choose_batch_tiling(B, max_width, max_tile_b=256):
    """tile_b is a sublane multiple; prefers >=2 tiles (megacore on v7x),
    full 256-row tiles at large B, and minimal last-tile padding waste."""
    if max_width >= 4096:
        max_tile_b = min(max_tile_b, 128)   # cap activation temporaries (v7x 64 MiB VMEM)
    b8 = _round_up(B, SUBLANE)
    if b8 >= 2 * max_tile_b:
        tile_b = max_tile_b                            # full MXU-row tiles, >= 2 of them
    elif b8 >= 2 * SUBLANE:
        tile_b = _round_up((b8 + 1) // 2, SUBLANE)     # exactly 2 tiles, minimal padding
    else:
        tile_b = b8                                    # single tiny tile
    return tile_b, _round_up(b8, tile_b)


# ----------------------------- Fused forward -----------------------------

def mlp_forward_fused(prepped, x):
    input_dim, hidden_dim, output_dim, _ = prepped["dims"]
    in_p, h_p, out_p = prepped["padded"]
    weights = prepped["weights"]
    b_all = prepped["bias"]
    num_linear = len(weights)
    compute_dtype = weights[0].dtype

    B = x.shape[0]
    max_width = max(in_p, h_p, out_p)
    tile_b, b_pad = _choose_batch_tiling(B, max_width)
    n_tiles = b_pad // tile_b
    x_p = jnp.pad(x, ((0, b_pad - B), (0, in_p - input_dim)))

    # --- VMEM budget (worst case: double-buffered weights) + scoped limit ---
    w_bytes = sum(W.size * W.dtype.itemsize for W in weights)
    b_bytes = b_all.size * 4
    act_bytes = 2 * (tile_b * in_p + tile_b * out_p) * 4        # pipelined I/O tiles
    tmp_bytes = 4 * tile_b * max_width * 4                      # live f32 intermediates
    needed = 2 * (w_bytes + b_bytes) + act_bytes + tmp_bytes
    cap = _vmem_capacity_bytes()
    if needed > int(0.9 * cap):
        # TODO(synk): stream weight K/N chunks from HBM (memory_space=pl.ANY +
        # pltpu.emit_pipeline) instead of keeping every weight VMEM-resident.
        raise ValueError(
            "MLP resident footprint (%d MiB) exceeds ~90%% of VMEM (%d MiB); "
            "streamed-weight fallback not implemented." % (needed >> 20, cap >> 20))
    vmem_limit = int(min(max(needed * 3 // 2, 16 << 20) + (4 << 20), int(0.9 * cap)))

    # --- cost estimate so XLA can schedule around the custom call ---
    flops = 2 * b_pad * sum(W.shape[0] * W.shape[1] for W in weights)
    bytes_accessed = x_p.size * 4 + w_bytes + b_bytes + b_pad * out_p * 4
    cost = pl.CostEstimate(flops=flops, transcendentals=0,
                           bytes_accessed=bytes_accessed)

    kernel = functools.partial(_fused_mlp_kernel, num_linear=num_linear,
                               compute_dtype=compute_dtype)

    def call(const_pipeline_mode):
        in_specs = [pl.BlockSpec((tile_b, in_p), lambda i: (i, 0))]
        for W in weights:
            # constant index_map -> weights stay VMEM-resident across batch tiles
            in_specs.append(pl.BlockSpec(W.shape, lambda i: (0, 0),
                                         pipeline_mode=const_pipeline_mode))
        in_specs.append(pl.BlockSpec(b_all.shape, lambda i: (0, 0),
                                     pipeline_mode=const_pipeline_mode))
        return pl.pallas_call(
            kernel,
            out_shape=jax.ShapeDtypeStruct((b_pad, out_p), x.dtype),
            grid=(n_tiles,),
            in_specs=in_specs,
            out_specs=pl.BlockSpec((tile_b, out_p), lambda i: (i, 0)),
            compiler_params=pltpu.CompilerParams(
                dimension_semantics=("parallel",),
                vmem_limit_bytes=vmem_limit),
            cost_estimate=cost,
        )(x_p, *weights, b_all)

    try:
        # Weights/bias never change across batch tiles -> single-buffer them
        # (halves resident-weight VMEM; matters on v7x's 64 MiB/TC).
        out_padded = call(pl.Buffered(1))
    except Exception:
        # Fallback: default double-buffering if this jax build rejects
        # pipeline_mode=pl.Buffered(1) on constant-index BlockSpecs.
        out_padded = call(None)

    return out_padded[:B, :output_dim]


# ----------------------------- Reference check -----------------------------

def mlp_forward_ref(params, embedding, num_layers):
    x = embedding
    for nl in range(1, num_layers + 1):
        W, b = params["layer{}".format(nl)]
        x = jax.nn.relu(x @ W.T + b)
    W0, b0 = params["layer0"]
    return x @ W0.T + b0


if __name__ == "__main__":
    input_dim, hidden_dim, output_dim, num_layers = 16, 32, 8, 3
    batch = 8

    key = jax.random.PRNGKey(0)
    key_params, key_x = jax.random.split(key)
    params = init_mlp_params(key_params, input_dim, hidden_dim, output_dim, num_layers)
    x = jax.random.normal(key_x, (batch, input_dim), dtype=jnp.float32)

    ref = mlp_forward_ref(params, x, num_layers)

    # 1) Exact f32 path: verifies semantics at tight tolerance.
    prepped_f32 = prepare_mlp_params(params, input_dim, hidden_dim, output_dim,
                                     num_layers, use_bf16=False)
    out_f32 = mlp_forward_fused(prepped_f32, x)
    jax.block_until_ready(out_f32)
    assert out_f32.shape == (batch, output_dim)
    assert jnp.allclose(out_f32, ref, atol=1e-5, rtol=1e-5), "f32 path mismatch"

    # 2) Fast bf16-MXU path (f32 accumulation): looser tolerance.
    prepped_bf16 = prepare_mlp_params(params, input_dim, hidden_dim, output_dim,
                                      num_layers, use_bf16=True)
    out_bf16 = mlp_forward_fused(prepped_bf16, x)
    jax.block_until_ready(out_bf16)
    assert out_bf16.shape == (batch, output_dim)
    assert jnp.allclose(out_bf16, ref, atol=5e-2, rtol=5e-2), "bf16 path mismatch"

    print("KERNEL_OK")
</pallas_src>

<mosaic_0001>
module attributes {stable_mosaic.version = 11 : i64} {
  func.func @_fused_mlp_kernel(%arg0: i32, %arg1: memref<8x128xf32, #tpu.memory_space<vmem>>, %arg2: memref<128x128xf32, #tpu.memory_space<vmem>>, %arg3: memref<128x128xf32, #tpu.memory_space<vmem>>, %arg4: memref<128x128xf32, #tpu.memory_space<vmem>>, %arg5: memref<128x128xf32, #tpu.memory_space<vmem>>, %arg6: memref<4x128xf32, #tpu.memory_space<vmem>>, %arg7: memref<8x128xf32, #tpu.memory_space<vmem>>) attributes {dimension_semantics = [#tpu.dimension_semantics<parallel>], iteration_bounds = array<i64: 1>, scalar_prefetch = 0 : i64, scratch_operands = 0 : i64, tpu.core_type = #tpu.core_type<tc>, window_params = [{transform_indices = @transform_0, window_bounds = array<i64: 8, 128>}, {pipeline_mode = #tpu.pipeline_mode<synchronous>, transform_indices = @transform_1, window_bounds = array<i64: 128, 128>}, {pipeline_mode = #tpu.pipeline_mode<synchronous>, transform_indices = @transform_2, window_bounds = array<i64: 128, 128>}, {pipeline_mode = #tpu.pipeline_mode<synchronous>, transform_indices = @transform_3, window_bounds = array<i64: 128, 128>}, {pipeline_mode = #tpu.pipeline_mode<synchronous>, transform_indices = @transform_4, window_bounds = array<i64: 128, 128>}, {pipeline_mode = #tpu.pipeline_mode<synchronous>, transform_indices = @transform_5, window_bounds = array<i64: 4, 128>}, {transform_indices = @transform_6, window_bounds = array<i64: 8, 128>}]} {
    %c0 = arith.constant 0 : index
    %c0_0 = arith.constant 0 : index
    %0 = vector.load %arg1[%c0, %c0_0] : memref<8x128xf32, #tpu.memory_space<vmem>>, vector<8x128xf32>
    %c0_1 = arith.constant 0 : index
    %c0_2 = arith.constant 0 : index
    %1 = vector.load %arg2[%c0_1, %c0_2] : memref<128x128xf32, #tpu.memory_space<vmem>>, vector<128x128xf32>
    %cst = arith.constant dense<0.000000e+00> : vector<8x128xf32>
    %2 = tpu.matmul %0, %1, %cst {dimension_numbers = #tpu.dot_dimension_numbers<[1], [0], [0], [1], [0, 0, 1, 1], [], []>} : vector<8x128xf32>, vector<128x128xf32>, vector<8x128xf32> -> vector<8x128xf32>
    %c0_3 = arith.constant 0 : index
    %c0_4 = arith.constant 0 : index
    %3 = vector.load %arg6[%c0_3, %c0_4] : memref<4x128xf32, #tpu.memory_space<vmem>>, vector<1x128xf32>
    %4 = vector.broadcast %3 : vector<1x128xf32> to vector<8x128xf32>
    %5 = arith.addf %2, %4 : vector<8x128xf32>
    %cst_5 = arith.constant 0.000000e+00 : f32
    %6 = vector.broadcast %cst_5 : f32 to vector<8x128xf32>
    %7 = arith.maximumf %5, %6 : vector<8x128xf32>
    %c0_6 = arith.constant 0 : index
    %c0_7 = arith.constant 0 : index
    %8 = vector.load %arg3[%c0_6, %c0_7] : memref<128x128xf32, #tpu.memory_space<vmem>>, vector<128x128xf32>
    %cst_8 = arith.constant dense<0.000000e+00> : vector<8x128xf32>
    %9 = tpu.matmul %7, %8, %cst_8 {dimension_numbers = #tpu.dot_dimension_numbers<[1], [0], [0], [1], [0, 0, 1, 1], [], []>} : vector<8x128xf32>, vector<128x128xf32>, vector<8x128xf32> -> vector<8x128xf32>
    %c1 = arith.constant 1 : index
    %c0_9 = arith.constant 0 : index
    %10 = vector.load %arg6[%c1, %c0_9] : memref<4x128xf32, #tpu.memory_space<vmem>>, vector<1x128xf32>
    %11 = vector.broadcast %10 : vector<1x128xf32> to vector<8x128xf32>
    %12 = arith.addf %9, %11 : vector<8x128xf32>
    %cst_10 = arith.constant 0.000000e+00 : f32
    %13 = vector.broadcast %cst_10 : f32 to vector<8x128xf32>
    %14 = arith.maximumf %12, %13 : vector<8x128xf32>
    %c0_11 = arith.constant 0 : index
    %c0_12 = arith.constant 0 : index
    %15 = vector.load %arg4[%c0_11, %c0_12] : memref<128x128xf32, #tpu.memory_space<vmem>>, vector<128x128xf32>
    %cst_13 = arith.constant dense<0.000000e+00> : vector<8x128xf32>
    %16 = tpu.matmul %14, %15, %cst_13 {dimension_numbers = #tpu.dot_dimension_numbers<[1], [0], [0], [1], [0, 0, 1, 1], [], []>} : vector<8x128xf32>, vector<128x128xf32>, vector<8x128xf32> -> vector<8x128xf32>
    %c2 = arith.constant 2 : index
    %c0_14 = arith.constant 0 : index
    %17 = vector.load %arg6[%c2, %c0_14] : memref<4x128xf32, #tpu.memory_space<vmem>>, vector<1x128xf32>
    %18 = vector.broadcast %17 : vector<1x128xf32> to vector<8x128xf32>
    %19 = arith.addf %16, %18 : vector<8x128xf32>
    %cst_15 = arith.constant 0.000000e+00 : f32
    %20 = vector.broadcast %cst_15 : f32 to vector<8x128xf32>
    %21 = arith.maximumf %19, %20 : vector<8x128xf32>
    %c0_16 = arith.constant 0 : index
    %c0_17 = arith.constant 0 : index
    %22 = vector.load %arg5[%c0_16, %c0_17] : memref<128x128xf32, #tpu.memory_space<vmem>>, vector<128x128xf32>
    %cst_18 = arith.constant dense<0.000000e+00> : vector<8x128xf32>
    %23 = tpu.matmul %21, %22, %cst_18 {dimension_numbers = #tpu.dot_dimension_numbers<[1], [0], [0], [1], [0, 0, 1, 1], [], []>} : vector<8x128xf32>, vector<128x128xf32>, vector<8x128xf32> -> vector<8x128xf32>
    %c3 = arith.constant 3 : index
    %c0_19 = arith.constant 0 : index
    %24 = vector.load %arg6[%c3, %c0_19] : memref<4x128xf32, #tpu.memory_space<vmem>>, vector<1x128xf32>
    %25 = vector.broadcast %24 : vector<1x128xf32> to vector<8x128xf32>
    %26 = arith.addf %23, %25 : vector<8x128xf32>
    %c0_20 = arith.constant 0 : index
    %c0_21 = arith.constant 0 : index
    %27 = vector.load %arg7[%c0_20, %c0_21] : memref<8x128xf32, #tpu.memory_space<vmem>>, vector<8x128xf32>
    tpu.vector_store %arg7[%c0_20, %c0_21], %26 {strides = array<i32>} : memref<8x128xf32, #tpu.memory_space<vmem>>, vector<8x128xf32>,
    return
  }
  func.func @transform_0(%arg0: i32) -> (i32, i32) {
    %c0_i32 = arith.constant 0 : i32
    %c0_i32_0 = arith.constant 0 : i32
    return %arg0, %c0_i32 : i32, i32
  }
  func.func @transform_1(%arg0: i32) -> (i32, i32) {
    %c0_i32 = arith.constant 0 : i32
    %c0_i32_0 = arith.constant 0 : i32
    %c0_i32_1 = arith.constant 0 : i32
    return %c0_i32, %c0_i32_0 : i32, i32
  }
  func.func @transform_2(%arg0: i32) -> (i32, i32) {
    %c0_i32 = arith.constant 0 : i32
    %c0_i32_0 = arith.constant 0 : i32
    %c0_i32_1 = arith.constant 0 : i32
    return %c0_i32, %c0_i32_0 : i32, i32
  }
  func.func @transform_3(%arg0: i32) -> (i32, i32) {
    %c0_i32 = arith.constant 0 : i32
    %c0_i32_0 = arith.constant 0 : i32
    %c0_i32_1 = arith.constant 0 : i32
    return %c0_i32, %c0_i32_0 : i32, i32
  }
  func.func @transform_4(%arg0: i32) -> (i32, i32) {
    %c0_i32 = arith.constant 0 : i32
    %c0_i32_0 = arith.constant 0 : i32
    %c0_i32_1 = arith.constant 0 : i32
    return %c0_i32, %c0_i32_0 : i32, i32
  }
  func.func @transform_5(%arg0: i32) -> (i32, i32) {
    %c0_i32 = arith.constant 0 : i32
    %c0_i32_0 = arith.constant 0 : i32
    %c0_i32_1 = arith.constant 0 : i32
    return %c0_i32, %c0_i32_0 : i32, i32
  }
  func.func @transform_6(%arg0: i32) -> (i32, i32) {
    %c0_i32 = arith.constant 0 : i32
    %c0_i32_0 = arith.constant 0 : i32
    return %arg0, %c0_i32 : i32, i32
  }
}

module attributes {stable_mosaic.version = 11 : i64} {
  func.func @_fused_mlp_kernel(%arg0: i32, %arg1: memref<8x128xf32, #tpu.memory_space<vmem>>, %arg2: memref<128x128xf32, #tpu.memory_space<vmem>>, %arg3: memref<128x128xf32, #tpu.memory_space<vmem>>, %arg4: memref<128x128xf32, #tpu.memory_space<vmem>>, %arg5: memref<128x128xf32, #tpu.memory_space<vmem>>, %arg6: memref<4x128xf32, #tpu.memory_space<vmem>>, %arg7: memref<8x128xf32, #tpu.memory_space<vmem>>) attributes {dimension_semantics = [#tpu.dimension_semantics<parallel>], iteration_bounds = array<i64: 1>, scalar_prefetch = 0 : i64, scratch_operands = 0 : i64, tpu.core_type = #tpu.core_type<tc>, window_params = [{transform_indices = @transform_0, window_bounds = array<i64: 8, 128>}, {pipeline_mode = #tpu.pipeline_mode<synchronous>, transform_indices = @transform_1, window_bounds = array<i64: 128, 128>}, {pipeline_mode = #tpu.pipeline_mode<synchronous>, transform_indices = @transform_2, window_bounds = array<i64: 128, 128>}, {pipeline_mode = #tpu.pipeline_mode<synchronous>, transform_indices = @transform_3, window_bounds = array<i64: 128, 128>}, {pipeline_mode = #tpu.pipeline_mode<synchronous>, transform_indices = @transform_4, window_bounds = array<i64: 128, 128>}, {pipeline_mode = #tpu.pipeline_mode<synchronous>, transform_indices = @transform_5, window_bounds = array<i64: 4, 128>}, {transform_indices = @transform_6, window_bounds = array<i64: 8, 128>}]} {
    %c0 = arith.constant 0 : index
    %c0_0 = arith.constant 0 : index
    %0 = vector.load %arg1[%c0, %c0_0] : memref<8x128xf32, #tpu.memory_space<vmem>>, vector<8x128xf32>
    %c0_1 = arith.constant 0 : index
    %c0_2 = arith.constant 0 : index
    %1 = vector.load %arg2[%c0_1, %c0_2] : memref<128x128xf32, #tpu.memory_space<vmem>>, vector<128x128xf32>
    %cst = arith.constant dense<0.000000e+00> : vector<8x128xf32>
    %2 = tpu.matmul %0, %1, %cst {dimension_numbers = #tpu.dot_dimension_numbers<[1], [0], [0], [1], [0, 0, 1, 1], [], []>} : vector<8x128xf32>, vector<128x128xf32>, vector<8x128xf32> -> vector<8x128xf32>
    %c0_3 = arith.constant 0 : index
    %c0_4 = arith.constant 0 : index
    %3 = vector.load %arg6[%c0_3, %c0_4] : memref<4x128xf32, #tpu.memory_space<vmem>>, vector<1x128xf32>
    %4 = vector.broadcast %3 : vector<1x128xf32> to vector<8x128xf32>
    %5 = arith.addf %2, %4 : vector<8x128xf32>
    %cst_5 = arith.constant 0.000000e+00 : f32
    %6 = vector.broadcast %cst_5 : f32 to vector<8x128xf32>
    %7 = arith.maximumf %5, %6 : vector<8x128xf32>
    %c0_6 = arith.constant 0 : index
    %c0_7 = arith.constant 0 : index
    %8 = vector.load %arg3[%c0_6, %c0_7] : memref<128x128xf32, #tpu.memory_space<vmem>>, vector<128x128xf32>
    %cst_8 = arith.constant dense<0.000000e+00> : vector<8x128xf32>
    %9 = tpu.matmul %7, %8, %cst_8 {dimension_numbers = #tpu.dot_dimension_numbers<[1], [0], [0], [1], [0, 0, 1, 1], [], []>} : vector<8x128xf32>, vector<128x128xf32>, vector<8x128xf32> -> vector<8x128xf32>
    %c1 = arith.constant 1 : index
    %c0_9 = arith.constant 0 : index
    %10 = vector.load %arg6[%c1, %c0_9] : memref<4x128xf32, #tpu.memory_space<vmem>>, vector<1x128xf32>
    %11 = vector.broadcast %10 : vector<1x128xf32> to vector<8x128xf32>
    %12 = arith.addf %9, %11 : vector<8x128xf32>
    %cst_10 = arith.constant 0.000000e+00 : f32
    %13 = vector.broadcast %cst_10 : f32 to vector<8x128xf32>
    %14 = arith.maximumf %12, %13 : vector<8x128xf32>
    %c0_11 = arith.constant 0 : index
    %c0_12 = arith.constant 0 : index
    %15 = vector.load %arg4[%c0_11, %c0_12] : memref<128x128xf32, #tpu.memory_space<vmem>>, vector<128x128xf32>
    %cst_13 = arith.constant dense<0.000000e+00> : vector<8x128xf32>
    %16 = tpu.matmul %14, %15, %cst_13 {dimension_numbers = #tpu.dot_dimension_numbers<[1], [0], [0], [1], [0, 0, 1, 1], [], []>} : vector<8x128xf32>, vector<128x128xf32>, vector<8x128xf32> -> vector<8x128xf32>
    %c2 = arith.constant 2 : index
    %c0_14 = arith.constant 0 : index
    %17 = vector.load %arg6[%c2, %c0_14] : memref<4x128xf32, #tpu.memory_space<vmem>>, vector<1x128xf32>
    %18 = vector.broadcast %17 : vector<1x128xf32> to vector<8x128xf32>
    %19 = arith.addf %16, %18 : vector<8x128xf32>
    %cst_15 = arith.constant 0.000000e+00 : f32
    %20 = vector.broadcast %cst_15 : f32 to vector<8x128xf32>
    %21 = arith.maximumf %19, %20 : vector<8x128xf32>
    %c0_16 = arith.constant 0 : index
    %c0_17 = arith.constant 0 : index
    %22 = vector.load %arg5[%c0_16, %c0_17] : memref<128x128xf32, #tpu.memory_space<vmem>>, vector<128x128xf32>
    %cst_18 = arith.constant dense<0.000000e+00> : vector<8x128xf32>
    %23 = tpu.matmul %21, %22, %cst_18 {dimension_numbers = #tpu.dot_dimension_numbers<[1], [0], [0], [1], [0, 0, 1, 1], [], []>} : vector<8x128xf32>, vector<128x128xf32>, vector<8x128xf32> -> vector<8x128xf32>
    %c3 = arith.constant 3 : index
    %c0_19 = arith.constant 0 : index
    %24 = vector.load %arg6[%c3, %c0_19] : memref<4x128xf32, #tpu.memory_space<vmem>>, vector<1x128xf32>
    %25 = vector.broadcast %24 : vector<1x128xf32> to vector<8x128xf32>
    %26 = arith.addf %23, %25 : vector<8x128xf32>
    %c0_20 = arith.constant 0 : index
    %c0_21 = arith.constant 0 : index
    %27 = vector.load %arg7[%c0_20, %c0_21] : memref<8x128xf32, #tpu.memory_space<vmem>>, vector<8x128xf32>
    tpu.vector_store %arg7[%c0_20, %c0_21], %26 {strides = array<i32>} : memref<8x128xf32, #tpu.memory_space<vmem>>, vector<8x128xf32>,
    return
  }
  func.func @transform_0(%arg0: i32) -> (i32, i32) {
    %c0_i32 = arith.constant 0 : i32
    %c0_i32_0 = arith.constant 0 : i32
    return %arg0, %c0_i32 : i32, i32
  }
  func.func @transform_1(%arg0: i32) -> (i32, i32) {
    %c0_i32 = arith.constant 0 : i32
    %c0_i32_0 = arith.constant 0 : i32
    %c0_i32_1 = arith.constant 0 : i32
    return %c0_i32, %c0_i32_0 : i32, i32
  }
  func.func @transform_2(%arg0: i32) -> (i32, i32) {
    %c0_i32 = arith.constant 0 : i32
    %c0_i32_0 = arith.constant 0 : i32
    %c0_i32_1 = arith.constant 0 : i32
    return %c0_i32, %c0_i32_0 : i32, i32
  }
  func.func @transform_3(%arg0: i32) -> (i32, i32) {
    %c0_i32 = arith.constant 0 : i32
    %c0_i32_0 = arith.constant 0 : i32
    %c0_i32_1 = arith.constant 0 : i32
    return %c0_i32, %c0_i32_0 : i32, i32
  }
  func.func @transform_4(%arg0: i32) -> (i32, i32) {
    %c0_i32 = arith.constant 0 : i32
    %c0_i32_0 = arith.constant 0 : i32
    %c0_i32_1 = arith.constant 0 : i32
    return %c0_i32, %c0_i32_0 : i32, i32
  }
  func.func @transform_5(%arg0: i32) -> (i32, i32) {
    %c0_i32 = arith.constant 0 : i32
    %c0_i32_0 = arith.constant 0 : i32
    %c0_i32_1 = arith.constant 0 : i32
    return %c0_i32, %c0_i32_0 : i32, i32
  }
  func.func @transform_6(%arg0: i32) -> (i32, i32) {
    %c0_i32 = arith.constant 0 : i32
    %c0_i32_0 = arith.constant 0 : i32
    return %arg0, %c0_i32 : i32, i32
  }
}

</mosaic_0001>

<bundles_post_ra>
// kernel: tpu_custom_call.1
= control target key start
LH: loop header
LB: loop body
LE: loop exit
PB: predicated region body
PF: predicated region fallthrough
CT: control target
= control target key end

     0   :  { %11 = vsyncpa [#allocation3], 0  ;;  %s1117_s0 = inlined_call_operand.hbm [shape: f32[8,128], index: 0, kind: input, shape index: {}]   ;;  %s1118_s1 = inlined_call_operand.hbm [shape: f32[128,128], index: 1, kind: input, shape index: {}]   ;;  %s1119_s2 = inlined_call_operand.hbm [shape: f32[128,128], index: 2, kind: input, shape index: {}]   ;;  %s1120_s3 = inlined_call_operand.hbm [shape: f32[128,128], index: 3, kind: input, shape index: {}]   ;;  %s1121_s4 = inlined_call_operand.hbm [shape: f32[128,128], index: 4, kind: input, shape index: {}]   ;;  %s1122_s5 = inlined_call_operand.vmem [shape: f32[4,128], index: 5, kind: input, shape index: {}]   ;;  %s1123_s6 = inlined_call_operand.hbm [shape: f32[8,128], index: 6, kind: output, shape index: {}]  }
   0x1   :  { %12 = vsyncpa [#allocation6], 0 }
   0x2   :  { %13 = vsyncpa [#allocation9], 0 }
   0x3   :  { %14 = vsyncpa [#allocation4], 0  ;;  %s935_s21 = smov [#allocation5]   ;;  %s795_s25 = scalar_lea.hbm %s1118_s1, 2048 }
   0x4   :  { %s30_s22 = sshll.u32 %s935_s21, 4  ;;  %p796_p0 = scmp.ne.s32.totalorder %s1118_s1, %s795_s25  ;;  %s31_s22 = int_to_ptr.vmem [resolvable:$true] %s30_s22 }
   0x5   :  { %p799_p1 = scmp.lt.u32.totalorder %s795_s25, %s1118_s1 }
   0x7   :  { %p801_p2 = pnand %p799_p1, %p796_p0 }
   0x9   :  { %804 = shalt.err (!%p801_p2)
}
   0xa   :  { %s805_s30 = scalar_lea.vmem %s31_s22, 2048  ;;  %p810_p4 = scmp.lt.s32.totalorder %s31_s22, %s31_s22 }
   0xb   :  { %p806_p3 = scmp.ne.s32.totalorder %s31_s22, %s805_s30  ;;  %p811_p5 = scmp.lt.s32.totalorder %s805_s30, %s805_s30 }
   0xd   :  { %p812_p6 = por %p811_p5, %p810_p4 }
   0xf   :  { %p813_p7 = pnand %p812_p6, %p806_p3 }
  0x11   :  { %816 = shalt.err (!%p813_p7)
}
  0x12   :  { %s936_s7 = smov 128   ;;  %s937_s8 = smov 8  }
  0x13   :  { %36 = dma.hbm_to_vmem [thread:$0]  %s1118_s1, 2048, %s31_s22, [#allocation6], %s936_s7, %s936_s7, %s937_s8  }
  0x14   :  { %s938_s11 = smov [#allocation8]   ;;  %s939_s13 = smov [#allocation2]  }
  0x15   :  { %s54_s12 = sshll.u32 %s938_s11, 4  ;;  %s21_s14 = sshll.u32 %s939_s13, 4  ;;  %s55_s12 = int_to_ptr.vmem [resolvable:$true] %s54_s12  ;;  %s22_s14 = int_to_ptr.vmem [resolvable:$true] %s21_s14 }
  0x16   :  { %s817_s17 = scalar_lea.hbm %s1120_s3, 2048 }
  0x17   :  { %p818_p8 = scmp.ne.s32.totalorder %s1120_s3, %s817_s17  ;;  %p821_p9 = scmp.lt.u32.totalorder %s817_s17, %s1120_s3 }
  0x19   :  { %p823_p10 = pnand %p821_p9, %p818_p8 }
  0x1b   :  { %826 = shalt.err (!%p823_p10)
}
  0x1c   :  { %s827_s1 = scalar_lea.vmem %s55_s12, 2048  ;;  %p832_p12 = scmp.lt.s32.totalorder %s55_s12, %s55_s12 }
  0x1d   :  { %p828_p11 = scmp.ne.s32.totalorder %s55_s12, %s827_s1  ;;  %p833_p13 = scmp.lt.s32.totalorder %s827_s1, %s827_s1 }
  0x1f   :  { %p834_p0 = por %p833_p13, %p832_p12 }
  0x21   :  { %p835_p1 = pnand %p834_p0, %p828_p11 }
  0x23   :  { %838 = shalt.err (!%p835_p1)
}
  0x24   :  { %60 = dma.hbm_to_vmem [thread:$0]  %s1120_s3, 2048, %s55_s12, [#allocation9], %s936_s7, %s936_s7, %s937_s8  }
  0x25   :  { %s839_s26 = scalar_lea.hbm %s1117_s0, 128 }
  0x26   :  { %p840_p2 = scmp.ne.s32.totalorder %s1117_s0, %s839_s26  ;;  %p843_p3 = scmp.lt.u32.totalorder %s839_s26, %s1117_s0 }
  0x28   :  { %p845_p4 = pnand %p843_p3, %p840_p2 }
  0x2a   :  { %848 = shalt.err (!%p845_p4)
}
  0x2b   :  { %s849_s9 = scalar_lea.vmem %s22_s14, 128  ;;  %p854_p6 = scmp.lt.s32.totalorder %s22_s14, %s22_s14 }
  0x2c   :  { %p850_p5 = scmp.ne.s32.totalorder %s22_s14, %s849_s9  ;;  %p855_p7 = scmp.lt.s32.totalorder %s849_s9, %s849_s9 }
  0x2e   :  { %p856_p8 = por %p855_p7, %p854_p6 }
  0x30   :  { %p857_p9 = pnand %p856_p8, %p850_p5 }
  0x32   :  { %860 = shalt.err (!%p857_p9)
}
  0x33   :  { %24 = dma.hbm_to_vmem [thread:$0]  %s1117_s0, 128, %s22_s14, [#allocation3]  }
  0x34   :  { %s940_s11 = smov [#allocation7]   ;;  %s941_s13 = smov [#allocation10]  }
  0x35   :  { %s42_s12 = sshll.u32 %s940_s11, 4  ;;  %s66_s15 = sshll.u32 %s941_s13, 4  ;;  %s43_s12 = int_to_ptr.vmem [resolvable:$true] %s42_s12  ;;  %s67_s15 = int_to_ptr.vmem [resolvable:$true] %s66_s15 }
  0x36   :  { %s861_s18 = scalar_lea.hbm %s1119_s2, 2048 }
  0x37   :  { %p862_p10 = scmp.ne.s32.totalorder %s1119_s2, %s861_s18  ;;  %p865_p11 = scmp.lt.u32.totalorder %s861_s18, %s1119_s2 }
  0x39   :  { %p867_p12 = pnand %p865_p11, %p862_p10 }
  0x3b   :  { %870 = shalt.err (!%p867_p12)
}
  0x3c   :  { %s871_s0 = scalar_lea.vmem %s43_s12, 2048  ;;  %p876_p0 = scmp.lt.s32.totalorder %s43_s12, %s43_s12 }
  0x3d   :  { %p872_p13 = scmp.ne.s32.totalorder %s43_s12, %s871_s0  ;;  %p877_p1 = scmp.lt.s32.totalorder %s871_s0, %s871_s0 }
  0x3f   :  { %p878_p2 = por %p877_p1, %p876_p0 }
  0x41   :  { %p879_p3 = pnand %p878_p2, %p872_p13 }
  0x43   :  { %882 = shalt.err (!%p879_p3)
}
  0x44   :  { %48 = dma.hbm_to_vmem [thread:$0]  %s1119_s2, 2048, %s43_s12, [#allocation6], %s936_s7, %s936_s7, %s937_s8  }
  0x45   :  { %s883_s25 = scalar_lea.hbm %s1121_s4, 2048 }
  0x46   :  { %p884_p4 = scmp.ne.s32.totalorder %s1121_s4, %s883_s25  ;;  %p887_p5 = scmp.lt.u32.totalorder %s883_s25, %s1121_s4 }
  0x48   :  { %p889_p6 = pnand %p887_p5, %p884_p4 }
  0x4a   :  { %892 = shalt.err (!%p889_p6)
}
  0x4b   :  { %s893_s30 = scalar_lea.vmem %s67_s15, 2048  ;;  %p898_p8 = scmp.lt.s32.totalorder %s67_s15, %s67_s15 }
  0x4c   :  { %p894_p7 = scmp.ne.s32.totalorder %s67_s15, %s893_s30  ;;  %p899_p9 = scmp.lt.s32.totalorder %s893_s30, %s893_s30 }
  0x4e   :  { %p900_p10 = por %p899_p9, %p898_p8 }
  0x50   :  { %p901_p11 = pnand %p900_p10, %p894_p7 }
  0x52   :  { %904 = shalt.err (!%p901_p11)
}
  0x53   :  { %72 = dma.hbm_to_vmem [thread:$0]  %s1121_s4, 2048, %s67_s15, [#allocation9], %s936_s7, %s936_s7, %s937_s8  }
  0x54   :  { %927 = dma.done.wait [#allocation3], 128  }
  0x55   :  { %928 = vsyncadd [#allocation3], 4294967168 }
  0x56   :  { %929 = dma.done.wait [#allocation6], 4096  }
  0x57   :  { %930 = vsyncadd [#allocation6], 4294963200 }
  0x58   :  { %931 = dma.done.wait [#allocation9], 4096  }
  0x59   :  { %932 = vsyncadd [#allocation9], 4294963200  ;;  %v942_v0 = vmov 0.0|0.0   ;;  %vm943_vm0 = vmmov 0   ;;  %v944_v1 = vmov 0.0   ;;  %v91_v2 = vld [vmem:[#allocation5] sm:$0xff] }
  0x5a   :  { %688 = vmatprep.subr.bf16.mxu0 %v942_v0  ;;  %580 = vmatprep.mubr.msk.f32.mxu0 %vm943_vm0, %v944_v1  ;;  %v92_v3 = vld [vmem:[#allocation5 + $0x8] sm:$0xff]  ;;  %v93_v4 = vld [vmem:[#allocation5 + $0x10] sm:$0xff]  ;;  %v94_v6 = vld [vmem:[#allocation5 + $0x18] sm:$0xff]  ;;  %s945_s15 = smov [#allocation11]  }
  0x5b   :  { %712 = vmatprep.subr.bf16.mxu1 %v942_v0  ;;  %615 = vmatprep.mubr.msk.f32.mxu1 %vm943_vm0, %v944_v1  ;;  %v689_v5 = vpack.c.bf16 %v92_v3, %v91_v2  ;;  %v692_v7 = vpack.c.bf16 %v94_v6, %v93_v4  ;;  %v95_v8 = vld [vmem:[#allocation5 + $0x20] sm:$0xff]  ;;  %v96_v9 = vld [vmem:[#allocation5 + $0x28] sm:$0xff]  ;;  %v185_v12 = vld [vmem:[#allocation7 + $0x10] sm:$0xff]  ;;  %s465_s16 = sshll.u32 %s945_s15, 4  ;;  %s466_s16 = int_to_ptr.vmem [resolvable:$true] %s465_s16 }
  0x5c   :  { %v183_v10 = vld [vmem:[#allocation7] sm:$0xff]  ;;  %v184_v11 = vld [vmem:[#allocation7 + $0x8] sm:$0xff]  ;;  %v186_v13 = vld [vmem:[#allocation7 + $0x18] sm:$0xff]  ;;  %v695_v14 = vpack.c.bf16 %v96_v9, %v95_v8  ;;  %s905_s17 = scalar_lea.vmem %s466_s16, 128  ;;  %p910_p13 = scmp.lt.s32.totalorder %s466_s16, %s466_s16 }
  0x5d   :  { %690 = vmatpush3.bf16.msra.mxu0 %v689_v5  ;;  %v713_v15 = vpack.c.bf16 %v184_v11, %v183_v10  ;;  %v97_v16 = vld [vmem:[#allocation5 + $0x30] sm:$0xff]  ;;  %v98_v17 = vld [vmem:[#allocation5 + $0x38] sm:$0xff]  ;;  %v716_v18 = vpack.c.bf16 %v186_v13, %v185_v12  ;;  %v187_v19 = vld [vmem:[#allocation7 + $0x20] sm:$0xff]  ;;  %p906_p12 = scmp.ne.s32.totalorder %s466_s16, %s905_s17  ;;  %p911_p0 = scmp.lt.s32.totalorder %s905_s17, %s905_s17 }
  0x5e   :  { %691 = vmatprep.subr.bf16.mxu0 %v942_v0  ;;  %v188_v20 = vld [vmem:[#allocation7 + $0x28] sm:$0xff]  ;;  %v698_v21 = vpack.c.bf16 %v98_v17, %v97_v16  ;;  %v99_v22 = vld [vmem:[#allocation5 + $0x40] sm:$0xff]  ;;  %v189_v25 = vld [vmem:[#allocation7 + $0x30] sm:$0xff] }
  0x5f   :  { %714 = vmatpush3.bf16.msra.mxu1 %v713_v15  ;;  %v100_v23 = vld [vmem:[#allocation5 + $0x48] sm:$0xff]  ;;  %v719_v24 = vpack.c.bf16 %v188_v20, %v187_v19  ;;  %v190_v26 = vld [vmem:[#allocation7 + $0x38] sm:$0xff]  ;;  %v101_v28 = vld [vmem:[#allocation5 + $0x50] sm:$0xff]  ;;  %p912_p1 = por %p911_p0, %p910_p13 }
  0x60   :  { %715 = vmatprep.subr.bf16.mxu1 %v942_v0  ;;  %v701_v27 = vpack.c.bf16 %v100_v23, %v99_v22  ;;  %v102_v29 = vld [vmem:[#allocation5 + $0x58] sm:$0xff]  ;;  %v722_v30 = vpack.c.bf16 %v190_v26, %v189_v25  ;;  %v191_v31 = vld [vmem:[#allocation7 + $0x40] sm:$0xff]  ;;  %v192_v32 = vld [vmem:[#allocation7 + $0x48] sm:$0xff] }
  0x61   :  { %693 = vmatpush3.bf16.msra.mxu0 %v692_v7  ;;  %v704_v33 = vpack.c.bf16 %v102_v29, %v101_v28  ;;  %v103_v34 = vld [vmem:[#allocation5 + $0x60] sm:$0xff]  ;;  %v104_v35 = vld [vmem:[#allocation5 + $0x68] sm:$0xff]  ;;  %v725_v36 = vpack.c.bf16 %v192_v32, %v191_v31  ;;  %v193_v37 = vld [vmem:[#allocation7 + $0x50] sm:$0xff]  ;;  %p913_p2 = pnand %p912_p1, %p906_p12 }
  0x62   :  { %694 = vmatprep.subr.bf16.mxu0 %v942_v0  ;;  %v194_v38 = vld [vmem:[#allocation7 + $0x58] sm:$0xff]  ;;  %v707_v39 = vpack.c.bf16 %v104_v35, %v103_v34  ;;  %v105_v40 = vld [vmem:[#allocation5 + $0x70] sm:$0xff]  ;;  %v195_v43 = vld [vmem:[#allocation7 + $0x60] sm:$0xff] }
  0x63   :  { %717 = vmatpush3.bf16.msra.mxu1 %v716_v18  ;;  %v106_v41 = vld [vmem:[#allocation5 + $0x78] sm:$0xff]  ;;  %v728_v42 = vpack.c.bf16 %v194_v38, %v193_v37  ;;  %v196_v44 = vld [vmem:[#allocation7 + $0x68] sm:$0xff]  ;;  %v197_v48 = vld [vmem:[#allocation7 + $0x70] sm:$0xff] }
  0x64   :  { %718 = vmatprep.subr.bf16.mxu1 %v942_v0  ;;  %v710_v45 = vpack.c.bf16 %v106_v41, %v105_v40  ;;  %v731_v46 = vpack.c.bf16 %v196_v44, %v195_v43  ;;  %v90_v47 = vld [vmem:[#allocation2] sm:$0xff]  ;;  %v275_v51 = vld [vmem:[#allocation8] sm:$0xff]  ;;  %v276_v52 = vld [vmem:[#allocation8 + $0x8] sm:$0xff] }
  0x65   :  { %696 = vmatpush3.bf16.msra.mxu0 %v695_v14  ;;  %v198_v49 = vld [vmem:[#allocation7 + $0x78] sm:$0xff]  ;;  %v277_v53 = vld [vmem:[#allocation8 + $0x10] sm:$0xff]  ;;  %v737_v54 = vpack.c.bf16 %v276_v52, %v275_v51  ;;  %v279_v57 = vld [vmem:[#allocation8 + $0x20] sm:$0xff] }
  0x66   :  { %697 = vmatprep.subr.bf16.mxu0 %v942_v0  ;;  %v734_v50 = vpack.c.bf16 %v198_v49, %v197_v48  ;;  %v278_v55 = vld [vmem:[#allocation8 + $0x18] sm:$0xff]  ;;  %v280_v58 = vld [vmem:[#allocation8 + $0x28] sm:$0xff]  ;;  %v281_v60 = vld [vmem:[#allocation8 + $0x30] sm:$0xff] }
  0x67   :  { %720 = vmatpush3.bf16.msra.mxu1 %v719_v24  ;;  %v740_v56 = vpack.c.bf16 %v278_v55, %v277_v53  ;;  %v743_v59 = vpack.c.bf16 %v280_v58, %v279_v57  ;;  %v282_v61 = vld [vmem:[#allocation8 + $0x38] sm:$0xff]  ;;  %v283_v63 = vld [vmem:[#allocation8 + $0x40] sm:$0xff]  ;;  %v284_v2 = vld [vmem:[#allocation8 + $0x48] sm:$0xff] }
  0x68   :  { %721 = vmatprep.subr.bf16.mxu1 %v942_v0  ;;  %v746_v62 = vpack.c.bf16 %v282_v61, %v281_v60  ;;  %v749_v3 = vpack.c.bf16 %v284_v2, %v283_v63  ;;  %v285_v4 = vld [vmem:[#allocation8 + $0x50] sm:$0xff]  ;;  %v286_v5 = vld [vmem:[#allocation8 + $0x58] sm:$0xff]  ;;  %v287_v7 = vld [vmem:[#allocation8 + $0x60] sm:$0xff] }
  0x69   :  { %699 = vmatpush3.bf16.msra.mxu0 %v698_v21  ;;  %v752_v6 = vpack.c.bf16 %v286_v5, %v285_v4  ;;  %v288_v8 = vld [vmem:[#allocation8 + $0x68] sm:$0xff]  ;;  %v476_v10 = vld [vmem:[%s1122_s5] ss:$0 sm:$0xff]  ;;  %v289_v15 = vld [vmem:[#allocation8 + $0x70] sm:$0xff] }
  0x6a   :  { %700 = vmatprep.subr.bf16.mxu0 %v942_v0  ;;  %v755_v9 = vpack.c.bf16 %v288_v8, %v287_v7  ;;  %v290_v16 = vld [vmem:[#allocation8 + $0x78] sm:$0xff]  ;;  %v367_v18 = vld [vmem:[#allocation10] sm:$0xff]  ;;  %v368_v19 = vld [vmem:[#allocation10 + $0x8] sm:$0xff] }
  0x6b   :  { %723 = vmatpush3.bf16.msra.mxu1 %v722_v30  ;;  %v758_v17 = vpack.c.bf16 %v290_v16, %v289_v15  ;;  %v369_v20 = vld [vmem:[#allocation10 + $0x10] sm:$0xff]  ;;  %v761_v21 = vpack.c.bf16 %v368_v19, %v367_v18  ;;  %v370_v22 = vld [vmem:[#allocation10 + $0x18] sm:$0xff]  ;;  %v371_v24 = vld [vmem:[#allocation10 + $0x20] sm:$0xff] }
  0x6c   :  { %724 = vmatprep.subr.bf16.mxu1 %v942_v0  ;;  %v764_v23 = vpack.c.bf16 %v370_v22, %v369_v20  ;;  %v372_v25 = vld [vmem:[#allocation10 + $0x28] sm:$0xff]  ;;  %v375_v29 = vld [vmem:[#allocation10 + $0x40] sm:$0xff]  ;;  %v377_v32 = vld [vmem:[#allocation10 + $0x50] sm:$0xff] }
  0x6d   :  { %702 = vmatpush3.bf16.msra.mxu0 %v701_v27  ;;  %v767_v26 = vpack.c.bf16 %v372_v25, %v371_v24  ;;  %v374_v27 = vld [vmem:[#allocation10 + $0x38] sm:$0xff]  ;;  %v376_v30 = vld [vmem:[#allocation10 + $0x48] sm:$0xff]  ;;  %v379_v35 = vld [vmem:[#allocation10 + $0x60] sm:$0xff] }
  0x6e   :  { %703 = vmatprep.subr.bf16.mxu0 %v942_v0  ;;  %v773_v31 = vpack.c.bf16 %v376_v30, %v375_v29  ;;  %v477_v38 = vld [vmem:[%s1122_s5 + $0x1] ss:$0 sm:$0xff]  ;;  %v381_v43 = vld [vmem:[#allocation10 + $0x70] sm:$0xff] }
  0x6f   :  { %726 = vmatpush3.bf16.msra.mxu1 %v725_v36  ;;  %v380_v36 = vld [vmem:[#allocation10 + $0x68] sm:$0xff]  ;;  %v382_v44 = vld [vmem:[#allocation10 + $0x78] sm:$0xff] }
  0x70   :  { %727 = vmatprep.subr.bf16.mxu1 %v942_v0  ;;  %v779_v37 = vpack.c.bf16 %v380_v36, %v379_v35 }
  0x71   :  { %705 = vmatpush3.bf16.msra.mxu0 %v704_v33  ;;  %v378_v33 = vld [vmem:[#allocation10 + $0x58] sm:$0xff] }
  0x72   :  { %706 = vmatprep.subr.bf16.mxu0 %v942_v0  ;;  %v776_v34 = vpack.c.bf16 %v378_v33, %v377_v32 }
  0x73   :  { %729 = vmatpush3.bf16.msra.mxu1 %v728_v42 }
  0x74   :  { %730 = vmatprep.subr.bf16.mxu1 %v942_v0 }
  0x75   :  { %708 = vmatpush3.bf16.msra.mxu0 %v707_v39 }
  0x76   :  { %709 = vmatprep.subr.bf16.mxu0 %v942_v0 }
  0x77   :  { %732 = vmatpush3.bf16.msra.mxu1 %v731_v46  ;;  %v478_v46 = vld [vmem:[%s1122_s5 + $0x2] ss:$0 sm:$0xff] }
  0x78   :  { %733 = vmatprep.subr.bf16.mxu1 %v942_v0 }
  0x79   :  { %711 = vmatpush3.bf16.msra.mxu0 %v710_v45  ;;  %v782_v45 = vpack.c.bf16 %v382_v44, %v381_v43 }
  0x7a   :  { %736 = vmatprep.subr.bf16.mxu0 %v942_v0 }
  0x7b   :  { %735 = vmatpush3.bf16.msra.mxu1 %v734_v50  ;;  %v479_v50 = vld [vmem:[%s1122_s5 + $0x3] ss:$0 sm:$0xff] }
  0x7c   :  { %581 = vmatmul.mubr.f32.vlgmr.msra.gmra.mrb[0].mxu0 %v90_v47  ;;  %760 = vmatprep.subr.bf16.mxu1 %v942_v0 }
  0x7d   :  { %650 = vmatprep.mubr.msk.f32.mxu0 %vm943_vm0, %v944_v1  ;;  %738 = vmatpush3.bf16.msra.mxu0 %v737_v54 }
  0x7e   :  { %739 = vmatprep.subr.bf16.mxu0 %v942_v0 }
  0x81   :  { %741 = vmatpush3.bf16.msra.mxu0 %v740_v56 }
  0x82   :  { %742 = vmatprep.subr.bf16.mxu0 %v942_v0 }
  0x85   :  { %744 = vmatpush3.bf16.msra.mxu0 %v743_v59 }
  0x86   :  { %745 = vmatprep.subr.bf16.mxu0 %v942_v0 }
  0x89   :  { %747 = vmatpush3.bf16.msra.mxu0 %v746_v62 }
  0x8a   :  { %748 = vmatprep.subr.bf16.mxu0 %v942_v0 }
  0x8d   :  { %750 = vmatpush3.bf16.msra.mxu0 %v749_v3 }
  0x8e   :  { %751 = vmatprep.subr.bf16.mxu0 %v942_v0 }
  0x91   :  { %753 = vmatpush3.bf16.msra.mxu0 %v752_v6 }
  0x92   :  { %754 = vmatprep.subr.bf16.mxu0 %v942_v0 }
  0x95   :  { %756 = vmatpush3.bf16.msra.mxu0 %v755_v9 }
  0x96   :  { %757 = vmatprep.subr.bf16.mxu0 %v942_v0 }
  0x99   :  { %759 = vmatpush3.bf16.msra.mxu0 %v758_v17 }
 0x14f   :  { %v178_v11 = vpop.f32.mrb[0].mxu0 }
 0x150   :  { %v179_v12 = vadd.f32 %v476_v10, %v178_v11  ;;  %v582_v13 = vpop.f32.mrb[1].mxu0 }
 0x152   :  { %v182_v14 = vmax.f32 %v179_v12, 0.0 }
 0x154   :  { %616 = vmatmul.mubr.f32.vlgmr.msra.gmra.mrb[0].mxu1 %v182_v14 }
 0x155   :  { %685 = vmatprep.mubr.msk.f32.mxu1 %vm943_vm0, %v944_v1  ;;  %762 = vmatpush3.bf16.msra.mxu1 %v761_v21  ;;  %v373_v1 = vld [vmem:[#allocation10 + $0x30] sm:$0xff] }
 0x156   :  { %763 = vmatprep.subr.bf16.mxu1 %v942_v0  ;;  %v770_v28 = vpack.c.bf16 %v374_v27, %v373_v1 }
 0x159   :  { %765 = vmatpush3.bf16.msra.mxu1 %v764_v23 }
 0x15a   :  { %766 = vmatprep.subr.bf16.mxu1 %v942_v0 }
 0x15d   :  { %768 = vmatpush3.bf16.msra.mxu1 %v767_v26 }
 0x15e   :  { %769 = vmatprep.subr.bf16.mxu1 %v942_v0 }
 0x161   :  { %771 = vmatpush3.bf16.msra.mxu1 %v770_v28 }
 0x162   :  { %772 = vmatprep.subr.bf16.mxu1 %v942_v0 }
 0x165   :  { %774 = vmatpush3.bf16.msra.mxu1 %v773_v31 }
 0x166   :  { %775 = vmatprep.subr.bf16.mxu1 %v942_v0 }
 0x169   :  { %777 = vmatpush3.bf16.msra.mxu1 %v776_v34 }
 0x16a   :  { %778 = vmatprep.subr.bf16.mxu1 %v942_v0 }
 0x16d   :  { %780 = vmatpush3.bf16.msra.mxu1 %v779_v37 }
 0x16e   :  { %781 = vmatprep.subr.bf16.mxu1 %v942_v0 }
 0x171   :  { %783 = vmatpush3.bf16.msra.mxu1 %v782_v45 }
 0x227   :  { %v270_v39 = vpop.f32.mrb[0].mxu1 }
 0x228   :  { %v271_v40 = vadd.f32 %v477_v38, %v270_v39  ;;  %v617_v41 = vpop.f32.mrb[1].mxu1 }
 0x22a   :  { %v274_v42 = vmax.f32 %v271_v40, 0.0 }
 0x22c   :  { %651 = vmatmul.mubr.f32.vlgmr.msra.gmra.mrb[2].mxu0 %v274_v42 }
 0x2ff   :  { %v362_v47 = vpop.f32.mrb[2].mxu0 }
 0x300   :  { %v363_v48 = vadd.f32 %v478_v46, %v362_v47  ;;  %v652_v0 = vpop.f32.mrb[3].mxu0 }
 0x302   :  { %v366_v49 = vmax.f32 %v363_v48, 0.0 }
 0x304   :  { %686 = vmatmul.mubr.f32.vlgmr.msra.gmra.mrb[2].mxu1 %v366_v49 }
 0x3d7   :  { %v454_v51 = vpop.f32.mrb[2].mxu1 }
 0x3d8   :  { %v455_v52 = vadd.f32 %v479_v50, %v454_v51  ;;  %v687_v53 = vpop.f32.mrb[3].mxu1 }
 0x3da   :  { %458 = vst [vmem:[#allocation11] sm:$0xff] %v455_v52 }
 0x3db   :  { %916 = shalt.err (!%p913_p2)
}
 0x3dc   :  { %s917_s20 = scalar_lea.hbm %s1123_s6, 128 }
 0x3dd   :  { %p918_p3 = scmp.ne.s32.totalorder %s1123_s6, %s917_s20  ;;  %p921_p4 = scmp.lt.u32.totalorder %s917_s20, %s1123_s6 }
 0x3df   :  { %p923_p5 = pnand %p921_p4, %p918_p3 }
 0x3e1   :  { %926 = shalt.err (!%p923_p5)
}
 0x3e2   :  { %468 = dma.vmem_to_hbm [thread:$0]  %s466_s16, 128, %s1123_s6, [#allocation4]  }
 0x3e3   :  { %933 = dma.done.wait [#allocation4], 128  }
 0x3e4   :  { %934 = vsyncadd [#allocation4], 4294967168 }
 0x3e5   :  { %472 = vsyncpa [#allocation3], 1 }
 0x3e6   :  { %473 = vsyncpa [#allocation6], 1 }
 0x3e7   :  { %474 = vsyncpa [#allocation9], 1 }
 0x3e8   :  { %475 = vsyncpa [#allocation4], 1 }

// kernel: tpu_custom_call.1
= control target key start
LH: loop header
LB: loop body
LE: loop exit
PB: predicated region body
PF: predicated region fallthrough
CT: control target
= control target key end

     0   :  { %11 = vsyncpa [#allocation3], 0  ;;  %s1117_s0 = inlined_call_operand.hbm [shape: f32[8,128], index: 0, kind: input, shape index: {}]   ;;  %s1118_s1 = inlined_call_operand.hbm [shape: f32[128,128], index: 1, kind: input, shape index: {}]   ;;  %s1119_s2 = inlined_call_operand.hbm [shape: f32[128,128], index: 2, kind: input, shape index: {}]   ;;  %s1120_s3 = inlined_call_operand.hbm [shape: f32[128,128], index: 3, kind: input, shape index: {}]   ;;  %s1121_s4 = inlined_call_operand.hbm [shape: f32[128,128], index: 4, kind: input, shape index: {}]   ;;  %s1122_s5 = inlined_call_operand.vmem [shape: f32[4,128], index: 5, kind: input, shape index: {}]   ;;  %s1123_s6 = inlined_call_operand.hbm [shape: f32[8,128], index: 6, kind: output, shape index: {}]  }
   0x1   :  { %12 = vsyncpa [#allocation6], 0 }
   0x2   :  { %13 = vsyncpa [#allocation9], 0 }
   0x3   :  { %14 = vsyncpa [#allocation4], 0  ;;  %s935_s21 = smov [#allocation5]   ;;  %s795_s25 = scalar_lea.hbm %s1118_s1, 2048 }
   0x4   :  { %s30_s22 = sshll.u32 %s935_s21, 4  ;;  %p796_p0 = scmp.ne.s32.totalorder %s1118_s1, %s795_s25  ;;  %s31_s22 = int_to_ptr.vmem [resolvable:$true] %s30_s22 }
   0x5   :  { %p799_p1 = scmp.lt.u32.totalorder %s795_s25, %s1118_s1 }
   0x7   :  { %p801_p2 = pnand %p799_p1, %p796_p0 }
   0x9   :  { %804 = shalt.err (!%p801_p2)
}
   0xa   :  { %s805_s30 = scalar_lea.vmem %s31_s22, 2048  ;;  %p810_p4 = scmp.lt.s32.totalorder %s31_s22, %s31_s22 }
   0xb   :  { %p806_p3 = scmp.ne.s32.totalorder %s31_s22, %s805_s30  ;;  %p811_p5 = scmp.lt.s32.totalorder %s805_s30, %s805_s30 }
   0xd   :  { %p812_p6 = por %p811_p5, %p810_p4 }
   0xf   :  { %p813_p7 = pnand %p812_p6, %p806_p3 }
  0x11   :  { %816 = shalt.err (!%p813_p7)
}
  0x12   :  { %s936_s7 = smov 128   ;;  %s937_s8 = smov 8  }
  0x13   :  { %36 = dma.hbm_to_vmem [thread:$0]  %s1118_s1, 2048, %s31_s22, [#allocation6], %s936_s7, %s936_s7, %s937_s8  }
  0x14   :  { %s938_s11 = smov [#allocation8]   ;;  %s939_s13 = smov [#allocation2]  }
  0x15   :  { %s54_s12 = sshll.u32 %s938_s11, 4  ;;  %s21_s14 = sshll.u32 %s939_s13, 4  ;;  %s55_s12 = int_to_ptr.vmem [resolvable:$true] %s54_s12  ;;  %s22_s14 = int_to_ptr.vmem [resolvable:$true] %s21_s14 }
  0x16   :  { %s817_s17 = scalar_lea.hbm %s1120_s3, 2048 }
  0x17   :  { %p818_p8 = scmp.ne.s32.totalorder %s1120_s3, %s817_s17  ;;  %p821_p9 = scmp.lt.u32.totalorder %s817_s17, %s1120_s3 }
  0x19   :  { %p823_p10 = pnand %p821_p9, %p818_p8 }
  0x1b   :  { %826 = shalt.err (!%p823_p10)
}
  0x1c   :  { %s827_s1 = scalar_lea.vmem %s55_s12, 2048  ;;  %p832_p12 = scmp.lt.s32.totalorder %s55_s12, %s55_s12 }
  0x1d   :  { %p828_p11 = scmp.ne.s32.totalorder %s55_s12, %s827_s1  ;;  %p833_p13 = scmp.lt.s32.totalorder %s827_s1, %s827_s1 }
  0x1f   :  { %p834_p0 = por %p833_p13, %p832_p12 }
  0x21   :  { %p835_p1 = pnand %p834_p0, %p828_p11 }
  0x23   :  { %838 = shalt.err (!%p835_p1)
}
  0x24   :  { %60 = dma.hbm_to_vmem [thread:$0]  %s1120_s3, 2048, %s55_s12, [#allocation9], %s936_s7, %s936_s7, %s937_s8  }
  0x25   :  { %s839_s26 = scalar_lea.hbm %s1117_s0, 128 }
  0x26   :  { %p840_p2 = scmp.ne.s32.totalorder %s1117_s0, %s839_s26  ;;  %p843_p3 = scmp.lt.u32.totalorder %s839_s26, %s1117_s0 }
  0x28   :  { %p845_p4 = pnand %p843_p3, %p840_p2 }
  0x2a   :  { %848 = shalt.err (!%p845_p4)
}
  0x2b   :  { %s849_s9 = scalar_lea.vmem %s22_s14, 128  ;;  %p854_p6 = scmp.lt.s32.totalorder %s22_s14, %s22_s14 }
  0x2c   :  { %p850_p5 = scmp.ne.s32.totalorder %s22_s14, %s849_s9  ;;  %p855_p7 = scmp.lt.s32.totalorder %s849_s9, %s849_s9 }
  0x2e   :  { %p856_p8 = por %p855_p7, %p854_p6 }
  0x30   :  { %p857_p9 = pnand %p856_p8, %p850_p5 }
  0x32   :  { %860 = shalt.err (!%p857_p9)
}
  0x33   :  { %24 = dma.hbm_to_vmem [thread:$0]  %s1117_s0, 128, %s22_s14, [#allocation3]  }
  0x34   :  { %s940_s11 = smov [#allocation7]   ;;  %s941_s13 = smov [#allocation10]  }
  0x35   :  { %s42_s12 = sshll.u32 %s940_s11, 4  ;;  %s66_s15 = sshll.u32 %s941_s13, 4  ;;  %s43_s12 = int_to_ptr.vmem [resolvable:$true] %s42_s12  ;;  %s67_s15 = int_to_ptr.vmem [resolvable:$true] %s66_s15 }
  0x36   :  { %s861_s18 = scalar_lea.hbm %s1119_s2, 2048 }
  0x37   :  { %p862_p10 = scmp.ne.s32.totalorder %s1119_s2, %s861_s18  ;;  %p865_p11 = scmp.lt.u32.totalorder %s861_s18, %s1119_s2 }
  0x39   :  { %p867_p12 = pnand %p865_p11, %p862_p10 }
  0x3b   :  { %870 = shalt.err (!%p867_p12)
}
  0x3c   :  { %s871_s0 = scalar_lea.vmem %s43_s12, 2048  ;;  %p876_p0 = scmp.lt.s32.totalorder %s43_s12, %s43_s12 }
  0x3d   :  { %p872_p13 = scmp.ne.s32.totalorder %s43_s12, %s871_s0  ;;  %p877_p1 = scmp.lt.s32.totalorder %s871_s0, %s871_s0 }
  0x3f   :  { %p878_p2 = por %p877_p1, %p876_p0 }
  0x41   :  { %p879_p3 = pnand %p878_p2, %p872_p13 }
  0x43   :  { %882 = shalt.err (!%p879_p3)
}
  0x44   :  { %48 = dma.hbm_to_vmem [thread:$0]  %s1119_s2, 2048, %s43_s12, [#allocation6], %s936_s7, %s936_s7, %s937_s8  }
  0x45   :  { %s883_s25 = scalar_lea.hbm %s1121_s4, 2048 }
  0x46   :  { %p884_p4 = scmp.ne.s32.totalorder %s1121_s4, %s883_s25  ;;  %p887_p5 = scmp.lt.u32.totalorder %s883_s25, %s1121_s4 }
  0x48   :  { %p889_p6 = pnand %p887_p5, %p884_p4 }
  0x4a   :  { %892 = shalt.err (!%p889_p6)
}
  0x4b   :  { %s893_s30 = scalar_lea.vmem %s67_s15, 2048  ;;  %p898_p8 = scmp.lt.s32.totalorder %s67_s15, %s67_s15 }
  0x4c   :  { %p894_p7 = scmp.ne.s32.totalorder %s67_s15, %s893_s30  ;;  %p899_p9 = scmp.lt.s32.totalorder %s893_s30, %s893_s30 }
  0x4e   :  { %p900_p10 = por %p899_p9, %p898_p8 }
  0x50   :  { %p901_p11 = pnand %p900_p10, %p894_p7 }
  0x52   :  { %904 = shalt.err (!%p901_p11)
}
  0x53   :  { %72 = dma.hbm_to_vmem [thread:$0]  %s1121_s4, 2048, %s67_s15, [#allocation9], %s936_s7, %s936_s7, %s937_s8  }
  0x54   :  { %927 = dma.done.wait [#allocation3], 128  }
  0x55   :  { %928 = vsyncadd [#allocation3], 4294967168 }
  0x56   :  { %929 = dma.done.wait [#allocation6], 4096  }
  0x57   :  { %930 = vsyncadd [#allocation6], 4294963200 }
  0x58   :  { %931 = dma.done.wait [#allocation9], 4096  }
  0x59   :  { %932 = vsyncadd [#allocation9], 4294963200  ;;  %v942_v0 = vmov 0.0|0.0   ;;  %vm943_vm0 = vmmov 0   ;;  %v944_v1 = vmov 0.0   ;;  %v91_v2 = vld [vmem:[#allocation5] sm:$0xff] }
  0x5a   :  { %688 = vmatprep.subr.bf16.mxu0 %v942_v0  ;;  %580 = vmatprep.mubr.msk.f32.mxu0 %vm943_vm0, %v944_v1  ;;  %v92_v3 = vld [vmem:[#allocation5 + $0x8] sm:$0xff]  ;;  %v93_v4 = vld [vmem:[#allocation5 + $0x10] sm:$0xff]  ;;  %v94_v6 = vld [vmem:[#allocation5 + $0x18] sm:$0xff]  ;;  %s945_s15 = smov [#allocation11]  }
  0x5b   :  { %712 = vmatprep.subr.bf16.mxu1 %v942_v0  ;;  %615 = vmatprep.mubr.msk.f32.mxu1 %vm943_vm0, %v944_v1  ;;  %v689_v5 = vpack.c.bf16 %v92_v3, %v91_v2  ;;  %v692_v7 = vpack.c.bf16 %v94_v6, %v93_v4  ;;  %v95_v8 = vld [vmem:[#allocation5 + $0x20] sm:$0xff]  ;;  %v96_v9 = vld [vmem:[#allocation5 + $0x28] sm:$0xff]  ;;  %v185_v12 = vld [vmem:[#allocation7 + $0x10] sm:$0xff]  ;;  %s465_s16 = sshll.u32 %s945_s15, 4  ;;  %s466_s16 = int_to_ptr.vmem [resolvable:$true] %s465_s16 }
  0x5c   :  { %v183_v10 = vld [vmem:[#allocation7] sm:$0xff]  ;;  %v184_v11 = vld [vmem:[#allocation7 + $0x8] sm:$0xff]  ;;  %v186_v13 = vld [vmem:[#allocation7 + $0x18] sm:$0xff]  ;;  %v695_v14 = vpack.c.bf16 %v96_v9, %v95_v8  ;;  %s905_s17 = scalar_lea.vmem %s466_s16, 128  ;;  %p910_p13 = scmp.lt.s32.totalorder %s466_s16, %s466_s16 }
  0x5d   :  { %690 = vmatpush3.bf16.msra.mxu0 %v689_v5  ;;  %v713_v15 = vpack.c.bf16 %v184_v11, %v183_v10  ;;  %v97_v16 = vld [vmem:[#allocation5 + $0x30] sm:$0xff]  ;;  %v98_v17 = vld [vmem:[#allocation5 + $0x38] sm:$0xff]  ;;  %v716_v18 = vpack.c.bf16 %v186_v13, %v185_v12  ;;  %v187_v19 = vld [vmem:[#allocation7 + $0x20] sm:$0xff]  ;;  %p906_p12 = scmp.ne.s32.totalorder %s466_s16, %s905_s17  ;;  %p911_p0 = scmp.lt.s32.totalorder %s905_s17, %s905_s17 }
  0x5e   :  { %691 = vmatprep.subr.bf16.mxu0 %v942_v0  ;;  %v188_v20 = vld [vmem:[#allocation7 + $0x28] sm:$0xff]  ;;  %v698_v21 = vpack.c.bf16 %v98_v17, %v97_v16  ;;  %v99_v22 = vld [vmem:[#allocation5 + $0x40] sm:$0xff]  ;;  %v189_v25 = vld [vmem:[#allocation7 + $0x30] sm:$0xff] }
  0x5f   :  { %714 = vmatpush3.bf16.msra.mxu1 %v713_v15  ;;  %v100_v23 = vld [vmem:[#allocation5 + $0x48] sm:$0xff]  ;;  %v719_v24 = vpack.c.bf16 %v188_v20, %v187_v19  ;;  %v190_v26 = vld [vmem:[#allocation7 + $0x38] sm:$0xff]  ;;  %v101_v28 = vld [vmem:[#allocation5 + $0x50] sm:$0xff]  ;;  %p912_p1 = por %p911_p0, %p910_p13 }
  0x60   :  { %715 = vmatprep.subr.bf16.mxu1 %v942_v0  ;;  %v701_v27 = vpack.c.bf16 %v100_v23, %v99_v22  ;;  %v102_v29 = vld [vmem:[#allocation5 + $0x58] sm:$0xff]  ;;  %v722_v30 = vpack.c.bf16 %v190_v26, %v189_v25  ;;  %v191_v31 = vld [vmem:[#allocation7 + $0x40] sm:$0xff]  ;;  %v192_v32 = vld [vmem:[#allocation7 + $0x48] sm:$0xff] }
  0x61   :  { %693 = vmatpush3.bf16.msra.mxu0 %v692_v7  ;;  %v704_v33 = vpack.c.bf16 %v102_v29, %v101_v28  ;;  %v103_v34 = vld [vmem:[#allocation5 + $0x60] sm:$0xff]  ;;  %v104_v35 = vld [vmem:[#allocation5 + $0x68] sm:$0xff]  ;;  %v725_v36 = vpack.c.bf16 %v192_v32, %v191_v31  ;;  %v193_v37 = vld [vmem:[#allocation7 + $0x50] sm:$0xff]  ;;  %p913_p2 = pnand %p912_p1, %p906_p12 }
  0x62   :  { %694 = vmatprep.subr.bf16.mxu0 %v942_v0  ;;  %v194_v38 = vld [vmem:[#allocation7 + $0x58] sm:$0xff]  ;;  %v707_v39 = vpack.c.bf16 %v104_v35, %v103_v34  ;;  %v105_v40 = vld [vmem:[#allocation5 + $0x70] sm:$0xff]  ;;  %v195_v43 = vld [vmem:[#allocation7 + $0x60] sm:$0xff] }
  0x63   :  { %717 = vmatpush3.bf16.msra.mxu1 %v716_v18  ;;  %v106_v41 = vld [vmem:[#allocation5 + $0x78] sm:$0xff]  ;;  %v728_v42 = vpack.c.bf16 %v194_v38, %v193_v37  ;;  %v196_v44 = vld [vmem:[#allocation7 + $0x68] sm:$0xff]  ;;  %v197_v48 = vld [vmem:[#allocation7 + $0x70] sm:$0xff] }
  0x64   :  { %718 = vmatprep.subr.bf16.mxu1 %v942_v0  ;;  %v710_v45 = vpack.c.bf16 %v106_v41, %v105_v40  ;;  %v731_v46 = vpack.c.bf16 %v196_v44, %v195_v43  ;;  %v90_v47 = vld [vmem:[#allocation2] sm:$0xff]  ;;  %v275_v51 = vld [vmem:[#allocation8] sm:$0xff]  ;;  %v276_v52 = vld [vmem:[#allocation8 + $0x8] sm:$0xff] }
  0x65   :  { %696 = vmatpush3.bf16.msra.mxu0 %v695_v14  ;;  %v198_v49 = vld [vmem:[#allocation7 + $0x78] sm:$0xff]  ;;  %v277_v53 = vld [vmem:[#allocation8 + $0x10] sm:$0xff]  ;;  %v737_v54 = vpack.c.bf16 %v276_v52, %v275_v51  ;;  %v279_v57 = vld [vmem:[#allocation8 + $0x20] sm:$0xff] }
  0x66   :  { %697 = vmatprep.subr.bf16.mxu0 %v942_v0  ;;  %v734_v50 = vpack.c.bf16 %v198_v49, %v197_v48  ;;  %v278_v55 = vld [vmem:[#allocation8 + $0x18] sm:$0xff]  ;;  %v280_v58 = vld [vmem:[#allocation8 + $0x28] sm:$0xff]  ;;  %v281_v60 = vld [vmem:[#allocation8 + $0x30] sm:$0xff] }
  0x67   :  { %720 = vmatpush3.bf16.msra.mxu1 %v719_v24  ;;  %v740_v56 = vpack.c.bf16 %v278_v55, %v277_v53  ;;  %v743_v59 = vpack.c.bf16 %v280_v58, %v279_v57  ;;  %v282_v61 = vld [vmem:[#allocation8 + $0x38] sm:$0xff]  ;;  %v283_v63 = vld [vmem:[#allocation8 + $0x40] sm:$0xff]  ;;  %v284_v2 = vld [vmem:[#allocation8 + $0x48] sm:$0xff] }
  0x68   :  { %721 = vmatprep.subr.bf16.mxu1 %v942_v0  ;;  %v746_v62 = vpack.c.bf16 %v282_v61, %v281_v60  ;;  %v749_v3 = vpack.c.bf16 %v284_v2, %v283_v63  ;;  %v285_v4 = vld [vmem:[#allocation8 + $0x50] sm:$0xff]  ;;  %v286_v5 = vld [vmem:[#allocation8 + $0x58] sm:$0xff]  ;;  %v287_v7 = vld [vmem:[#allocation8 + $0x60] sm:$0xff] }
  0x69   :  { %699 = vmatpush3.bf16.msra.mxu0 %v698_v21  ;;  %v752_v6 = vpack.c.bf16 %v286_v5, %v285_v4  ;;  %v288_v8 = vld [vmem:[#allocation8 + $0x68] sm:$0xff]  ;;  %v476_v10 = vld [vmem:[%s1122_s5] ss:$0 sm:$0xff]  ;;  %v289_v15 = vld [vmem:[#allocation8 + $0x70] sm:$0xff] }
  0x6a   :  { %700 = vmatprep.subr.bf16.mxu0 %v942_v0  ;;  %v755_v9 = vpack.c.bf16 %v288_v8, %v287_v7  ;;  %v290_v16 = vld [vmem:[#allocation8 + $0x78] sm:$0xff]  ;;  %v367_v18 = vld [vmem:[#allocation10] sm:$0xff]  ;;  %v368_v19 = vld [vmem:[#allocation10 + $0x8] sm:$0xff] }
  0x6b   :  { %723 = vmatpush3.bf16.msra.mxu1 %v722_v30  ;;  %v758_v17 = vpack.c.bf16 %v290_v16, %v289_v15  ;;  %v369_v20 = vld [vmem:[#allocation10 + $0x10] sm:$0xff]  ;;  %v761_v21 = vpack.c.bf16 %v368_v19, %v367_v18  ;;  %v370_v22 = vld [vmem:[#allocation10 + $0x18] sm:$0xff]  ;;  %v371_v24 = vld [vmem:[#allocation10 + $0x20] sm:$0xff] }
  0x6c   :  { %724 = vmatprep.subr.bf16.mxu1 %v942_v0  ;;  %v764_v23 = vpack.c.bf16 %v370_v22, %v369_v20  ;;  %v372_v25 = vld [vmem:[#allocation10 + $0x28] sm:$0xff]  ;;  %v375_v29 = vld [vmem:[#allocation10 + $0x40] sm:$0xff]  ;;  %v377_v32 = vld [vmem:[#allocation10 + $0x50] sm:$0xff] }
  0x6d   :  { %702 = vmatpush3.bf16.msra.mxu0 %v701_v27  ;;  %v767_v26 = vpack.c.bf16 %v372_v25, %v371_v24  ;;  %v374_v27 = vld [vmem:[#allocation10 + $0x38] sm:$0xff]  ;;  %v376_v30 = vld [vmem:[#allocation10 + $0x48] sm:$0xff]  ;;  %v379_v35 = vld [vmem:[#allocation10 + $0x60] sm:$0xff] }
  0x6e   :  { %703 = vmatprep.subr.bf16.mxu0 %v942_v0  ;;  %v773_v31 = vpack.c.bf16 %v376_v30, %v375_v29  ;;  %v477_v38 = vld [vmem:[%s1122_s5 + $0x1] ss:$0 sm:$0xff]  ;;  %v381_v43 = vld [vmem:[#allocation10 + $0x70] sm:$0xff] }
  0x6f   :  { %726 = vmatpush3.bf16.msra.mxu1 %v725_v36  ;;  %v380_v36 = vld [vmem:[#allocation10 + $0x68] sm:$0xff]  ;;  %v382_v44 = vld [vmem:[#allocation10 + $0x78] sm:$0xff] }
  0x70   :  { %727 = vmatprep.subr.bf16.mxu1 %v942_v0  ;;  %v779_v37 = vpack.c.bf16 %v380_v36, %v379_v35 }
  0x71   :  { %705 = vmatpush3.bf16.msra.mxu0 %v704_v33  ;;  %v378_v33 = vld [vmem:[#allocation10 + $0x58] sm:$0xff] }
  0x72   :  { %706 = vmatprep.subr.bf16.mxu0 %v942_v0  ;;  %v776_v34 = vpack.c.bf16 %v378_v33, %v377_v32 }
  0x73   :  { %729 = vmatpush3.bf16.msra.mxu1 %v728_v42 }
  0x74   :  { %730 = vmatprep.subr.bf16.mxu1 %v942_v0 }
  0x75   :  { %708 = vmatpush3.bf16.msra.mxu0 %v707_v39 }
  0x76   :  { %709 = vmatprep.subr.bf16.mxu0 %v942_v0 }
  0x77   :  { %732 = vmatpush3.bf16.msra.mxu1 %v731_v46  ;;  %v478_v46 = vld [vmem:[%s1122_s5 + $0x2] ss:$0 sm:$0xff] }
  0x78   :  { %733 = vmatprep.subr.bf16.mxu1 %v942_v0 }
  0x79   :  { %711 = vmatpush3.bf16.msra.mxu0 %v710_v45  ;;  %v782_v45 = vpack.c.bf16 %v382_v44, %v381_v43 }
  0x7a   :  { %736 = vmatprep.subr.bf16.mxu0 %v942_v0 }
  0x7b   :  { %735 = vmatpush3.bf16.msra.mxu1 %v734_v50  ;;  %v479_v50 = vld [vmem:[%s1122_s5 + $0x3] ss:$0 sm:$0xff] }
  0x7c   :  { %581 = vmatmul.mubr.f32.vlgmr.msra.gmra.mrb[0].mxu0 %v90_v47  ;;  %760 = vmatprep.subr.bf16.mxu1 %v942_v0 }
  0x7d   :  { %650 = vmatprep.mubr.msk.f32.mxu0 %vm943_vm0, %v944_v1  ;;  %738 = vmatpush3.bf16.msra.mxu0 %v737_v54 }
  0x7e   :  { %739 = vmatprep.subr.bf16.mxu0 %v942_v0 }
  0x81   :  { %741 = vmatpush3.bf16.msra.mxu0 %v740_v56 }
  0x82   :  { %742 = vmatprep.subr.bf16.mxu0 %v942_v0 }
  0x85   :  { %744 = vmatpush3.bf16.msra.mxu0 %v743_v59 }
  0x86   :  { %745 = vmatprep.subr.bf16.mxu0 %v942_v0 }
  0x89   :  { %747 = vmatpush3.bf16.msra.mxu0 %v746_v62 }
  0x8a   :  { %748 = vmatprep.subr.bf16.mxu0 %v942_v0 }
  0x8d   :  { %750 = vmatpush3.bf16.msra.mxu0 %v749_v3 }
  0x8e   :  { %751 = vmatprep.subr.bf16.mxu0 %v942_v0 }
  0x91   :  { %753 = vmatpush3.bf16.msra.mxu0 %v752_v6 }
  0x92   :  { %754 = vmatprep.subr.bf16.mxu0 %v942_v0 }
  0x95   :  { %756 = vmatpush3.bf16.msra.mxu0 %v755_v9 }
  0x96   :  { %757 = vmatprep.subr.bf16.mxu0 %v942_v0 }
  0x99   :  { %759 = vmatpush3.bf16.msra.mxu0 %v758_v17 }
 0x14f   :  { %v178_v11 = vpop.f32.mrb[0].mxu0 }
 0x150   :  { %v179_v12 = vadd.f32 %v476_v10, %v178_v11  ;;  %v582_v13 = vpop.f32.mrb[1].mxu0 }
 0x152   :  { %v182_v14 = vmax.f32 %v179_v12, 0.0 }
 0x154   :  { %616 = vmatmul.mubr.f32.vlgmr.msra.gmra.mrb[0].mxu1 %v182_v14 }
 0x155   :  { %685 = vmatprep.mubr.msk.f32.mxu1 %vm943_vm0, %v944_v1  ;;  %762 = vmatpush3.bf16.msra.mxu1 %v761_v21  ;;  %v373_v1 = vld [vmem:[#allocation10 + $0x30] sm:$0xff] }
 0x156   :  { %763 = vmatprep.subr.bf16.mxu1 %v942_v0  ;;  %v770_v28 = vpack.c.bf16 %v374_v27, %v373_v1 }
 0x159   :  { %765 = vmatpush3.bf16.msra.mxu1 %v764_v23 }
 0x15a   :  { %766 = vmatprep.subr.bf16.mxu1 %v942_v0 }
 0x15d   :  { %768 = vmatpush3.bf16.msra.mxu1 %v767_v26 }
 0x15e   :  { %769 = vmatprep.subr.bf16.mxu1 %v942_v0 }
 0x161   :  { %771 = vmatpush3.bf16.msra.mxu1 %v770_v28 }
 0x162   :  { %772 = vmatprep.subr.bf16.mxu1 %v942_v0 }
 0x165   :  { %774 = vmatpush3.bf16.msra.mxu1 %v773_v31 }
 0x166   :  { %775 = vmatprep.subr.bf16.mxu1 %v942_v0 }
 0x169   :  { %777 = vmatpush3.bf16.msra.mxu1 %v776_v34 }
 0x16a   :  { %778 = vmatprep.subr.bf16.mxu1 %v942_v0 }
 0x16d   :  { %780 = vmatpush3.bf16.msra.mxu1 %v779_v37 }
 0x16e   :  { %781 = vmatprep.subr.bf16.mxu1 %v942_v0 }
 0x171   :  { %783 = vmatpush3.bf16.msra.mxu1 %v782_v45 }
 0x227   :  { %v270_v39 = vpop.f32.mrb[0].mxu1 }
 0x228   :  { %v271_v40 = vadd.f32 %v477_v38, %v270_v39  ;;  %v617_v41 = vpop.f32.mrb[1].mxu1 }
 0x22a   :  { %v274_v42 = vmax.f32 %v271_v40, 0.0 }
 0x22c   :  { %651 = vmatmul.mubr.f32.vlgmr.msra.gmra.mrb[2].mxu0 %v274_v42 }
 0x2ff   :  { %v362_v47 = vpop.f32.mrb[2].mxu0 }
 0x300   :  { %v363_v48 = vadd.f32 %v478_v46, %v362_v47  ;;  %v652_v0 = vpop.f32.mrb[3].mxu0 }
 0x302   :  { %v366_v49 = vmax.f32 %v363_v48, 0.0 }
 0x304   :  { %686 = vmatmul.mubr.f32.vlgmr.msra.gmra.mrb[2].mxu1 %v366_v49 }
 0x3d7   :  { %v454_v51 = vpop.f32.mrb[2].mxu1 }
 0x3d8   :  { %v455_v52 = vadd.f32 %v479_v50, %v454_v51  ;;  %v687_v53 = vpop.f32.mrb[3].mxu1 }
 0x3da   :  { %458 = vst [vmem:[#allocation11] sm:$0xff] %v455_v52 }
 0x3db   :  { %916 = shalt.err (!%p913_p2)
}
 0x3dc   :  { %s917_s20 = scalar_lea.hbm %s1123_s6, 128 }
 0x3dd   :  { %p918_p3 = scmp.ne.s32.totalorder %s1123_s6, %s917_s20  ;;  %p921_p4 = scmp.lt.u32.totalorder %s917_s20, %s1123_s6 }
 0x3df   :  { %p923_p5 = pnand %p921_p4, %p918_p3 }
 0x3e1   :  { %926 = shalt.err (!%p923_p5)
}
 0x3e2   :  { %468 = dma.vmem_to_hbm [thread:$0]  %s466_s16, 128, %s1123_s6, [#allocation4]  }
 0x3e3   :  { %933 = dma.done.wait [#allocation4], 128  }
 0x3e4   :  { %934 = vsyncadd [#allocation4], 4294967168 }
 0x3e5   :  { %472 = vsyncpa [#allocation3], 1 }
 0x3e6   :  { %473 = vsyncpa [#allocation6], 1 }
 0x3e7   :  { %474 = vsyncpa [#allocation9], 1 }
 0x3e8   :  { %475 = vsyncpa [#allocation4], 1 }

</bundles_post_ra>
